<compile_context>
chip_gen: v5e
topology: v5e:2x2
jax: 0.10.0
libtpu: 0.0.40
codegen_flags: <defaults>
</compile_context>

<pallas_src>
import numpy as np
import jax
import jax.numpy as jnp
from jax.experimental import pallas as pl
from jax.experimental.pallas import tpu as pltpu

# ----------------------------- config (mirrors cfg.*) -----------------------
SEED = 0
NUM_SAMPLES = 5          # AdaptiveIndexColouring num_samples
RATIO = 1.0              # AdaptiveIndexColouring ratio
DIM_IN_RAW = 8           # raw node feature dim
EDGE_DIM_RAW = 4         # raw edge feature dim
DIM_INNER = 32           # cfg.gnn.dim_inner
DIM_OUT = 4              # head output dim
LAYERS_MP = 2            # cfg.gnn.layers_mp
EPS = 0.0                # GINEConv eps
LANE = 128               # pad hidden/out feature dim to the 128-lane vreg width


# ----------------------------- fused Pallas kernel ---------------------------
def _fused_forward_kernel(x_raw_ref, e_raw_ref, src_oh_ref, dst_oh_ref,
                          nw_ref, nb_ref, ew_ref, eb_ref,
                          w1s_ref, b1s_ref, w2s_ref, b2s_ref,
                          pool_ref, hw_ref, hb_ref,
                          o_ref):
    # FeatureEncoder: node + edge linear encoders (lane-padded to 128).
    x = jnp.dot(x_raw_ref[...], nw_ref[...],
                preferred_element_type=jnp.float32) + nb_ref[...]     # (N, 128)
    e = jnp.dot(e_raw_ref[...], ew_ref[...],
                preferred_element_type=jnp.float32) + eb_ref[...]     # (E, 128)

    src_oh = src_oh_ref[...]                                          # (E, N)
    dst_oh = dst_oh_ref[...]                                          # (N, E)

    # Message-passing layers (static unroll; LAYERS_MP is small and fixed).
    for l in range(LAYERS_MP):
        # message: relu(x[src] + e_ij); gather expressed as one-hot MXU matmul
        msg = jnp.maximum(
            jnp.dot(src_oh, x, preferred_element_type=jnp.float32) + e, 0.0)
        # aggregate (scatter-add to dst) as dense matmul
        aggr = jnp.dot(dst_oh, msg, preferred_element_type=jnp.float32)
        h = (1.0 + EPS) * x + aggr
        # GIN nn: Linear -> ReLU -> Linear
        h = jnp.maximum(
            jnp.dot(h, w1s_ref[l], preferred_element_type=jnp.float32)
            + b1s_ref[l], 0.0)
        h = jnp.dot(h, w2s_ref[l], preferred_element_type=jnp.float32) + b2s_ref[l]
        # GINEConvLayer epilogue: relu, dropout (identity in eval), residual
        x = x + jnp.maximum(h, 0.0)

    # MeanAveraging over samples is the identity here (all samples identical,
    # colours unused), so the readout matrix is just the normalized per-graph
    # mean pool.  Head: pooled @ W_head (+b), all lane-padded to 128.
    pooled = jnp.dot(pool_ref[...], x, preferred_element_type=jnp.float32)
    o_ref[...] = (jnp.dot(pooled, hw_ref[...],
                          preferred_element_type=jnp.float32) + hb_ref[...])


# ----------------------------- painter (glue) --------------------------------
def adaptive_index_colouring(key, sizes, num_samples, ratio):
    """JAX port of AdaptiveIndexColouring.colours (index generation, not a hot
    path -> plain JAX / host code)."""
    colours, sample_index, sample_batch = [], [], []
    inc = 0
    for g, gsize in enumerate(sizes):
        gsize = int(gsize)
        valid = min(int(gsize * ratio), num_samples)
        sample_index.append(np.arange(valid, dtype=np.int32) + inc)
        sample_batch.append(np.full((valid,), g, dtype=np.int32))
        lowest = min(gsize, num_samples)
        key, sub = jax.random.split(key)
        perm = jax.random.permutation(sub, gsize)
        indices = jnp.zeros((num_samples,), jnp.int32).at[:lowest].set(
            perm[:lowest].astype(jnp.int32))
        coloring = jax.nn.one_hot(indices, gsize, dtype=jnp.float32).T  # (gsize, S)
        colours.append(coloring)
        inc += num_samples
    return (jnp.concatenate(colours, axis=0),
            jnp.asarray(np.concatenate(sample_index)),
            jnp.asarray(np.concatenate(sample_batch)))


# ----------------------------- padding helpers (trace time) ------------------
def _pad_last(a, target=LANE):
    pad = target - a.shape[-1]
    return jnp.pad(a, [(0, 0)] * (a.ndim - 1) + [(0, pad)])


def _pad_square(a, target=LANE):
    return jnp.pad(a, [(0, target - a.shape[0]), (0, target - a.shape[1])])


# ----------------------------- full forward ----------------------------------
def colour_gnn_forward(x_raw, edge_attr_raw, edge_index, sizes, node_batch,
                       params, colour_key):
    n = x_raw.shape[0]
    g = len(sizes)

    # AdaptiveIndexColouring.paint (index generation)
    c_samples, sample_index, sample_batch = adaptive_index_colouring(
        colour_key, sizes, NUM_SAMPLES, RATIO)
    # TODO(synk): GINEConvLayerColour internals are not provided; c_samples /
    # sample_index / sample_batch are produced exactly as in the reference but
    # are not consumed by the conv, so all NUM_SAMPLES copies of x_repeated are
    # identical and MeanAveraging is the identity -> the fused kernel runs one
    # sample stream.  Reintroduce the sample axis when the colour-conditioned
    # conv lands.

    # Dense incidence matrices so gather/scatter become MXU matmuls.
    # TODO(synk): replace with a scalar-prefetch / tiled gather path before
    # scaling N/E (these are O(E*N) f32 and would blow VMEM on large graphs,
    # hitting v7x's 64 MiB first).
    src_oh = jax.nn.one_hot(edge_index[0], n, dtype=jnp.float32)        # (E, N)
    dst_oh = jax.nn.one_hot(edge_index[1], n, dtype=jnp.float32).T      # (N, E)

    # Fused readout matrix: per-graph mean pool, normalization folded at trace
    # time (the 1/S sample-mean factor is an identity and so is omitted).
    pool = jax.nn.one_hot(node_batch, g, dtype=jnp.float32).T           # (G, N)
    pool = pool / jnp.sum(pool, axis=1, keepdims=True)

    # Lane-dense weight/bias padding to 128 (zeros do not change the math).
    nw = _pad_last(params["node_enc_w"])
    nb = _pad_last(params["node_enc_b"].reshape(1, -1))
    ew = _pad_last(params["edge_enc_w"])
    eb = _pad_last(params["edge_enc_b"].reshape(1, -1))
    w1s = jnp.stack([_pad_square(lp["w1"]) for lp in params["layers"]])
    b1s = jnp.stack([_pad_last(lp["b1"].reshape(1, -1)) for lp in params["layers"]])
    w2s = jnp.stack([_pad_square(lp["w2"]) for lp in params["layers"]])
    b2s = jnp.stack([_pad_last(lp["b2"].reshape(1, -1)) for lp in params["layers"]])
    hw = _pad_square(params["head_w"])
    hb = _pad_last(params["head_b"].reshape(1, -1))

    # Single fused pallas_call: everything resident in VMEM, no grid.
    vmem_spec = pl.BlockSpec(memory_space=pltpu.MemorySpace.VMEM)
    out_pad = pl.pallas_call(
        _fused_forward_kernel,
        in_specs=[vmem_spec] * 15,
        out_specs=vmem_spec,
        out_shape=jax.ShapeDtypeStruct((g, LANE), jnp.float32),
    )(x_raw, edge_attr_raw, src_oh, dst_oh,
      nw, nb, ew, eb, w1s, b1s, w2s, b2s, pool, hw, hb)

    out = out_pad[:, :DIM_OUT]
    return out, c_samples, sample_index, sample_batch


# ----------------------------- setup / main -----------------------------------
def glorot(k, shape):
    lim = float(np.sqrt(6.0 / (shape[0] + shape[1])))
    return jax.random.uniform(k, shape, jnp.float32, -lim, lim)


def build_params(key):
    n_keys = 3 + 2 * LAYERS_MP
    ks = jax.random.split(key, n_keys)
    params = {
        "node_enc_w": glorot(ks[0], (DIM_IN_RAW, DIM_INNER)),
        "node_enc_b": jnp.zeros((DIM_INNER,), jnp.float32),
        "edge_enc_w": glorot(ks[1], (EDGE_DIM_RAW, DIM_INNER)),
        "edge_enc_b": jnp.zeros((DIM_INNER,), jnp.float32),
        "head_w": glorot(ks[2], (DIM_INNER, DIM_OUT)),
        "head_b": jnp.zeros((DIM_OUT,), jnp.float32),
        "layers": [],
    }
    for li in range(LAYERS_MP):
        params["layers"].append({
            "w1": glorot(ks[3 + 2 * li], (DIM_INNER, DIM_INNER)),
            "b1": jnp.zeros((DIM_INNER,), jnp.float32),
            "w2": glorot(ks[4 + 2 * li], (DIM_INNER, DIM_INNER)),
            "b2": jnp.zeros((DIM_INNER,), jnp.float32),
        })
    return params


if __name__ == "__main__":
    key = jax.random.PRNGKey(0)
    k_x, k_e, k_p, k_col = jax.random.split(key, 4)

    # synthetic graph batch: 2 graphs of 8 nodes each
    sizes = [8, 8]
    N = sum(sizes)
    G = len(sizes)
    ptr = np.cumsum([0] + sizes)
    node_batch = jnp.asarray(np.repeat(np.arange(G, dtype=np.int32), sizes))

    # deterministic within-graph random edges
    rng = np.random.default_rng(0)
    E_per = 24
    src_list, dst_list = [], []
    for g_i in range(G):
        src_list.append(rng.integers(ptr[g_i], ptr[g_i + 1], size=E_per))
        dst_list.append(rng.integers(ptr[g_i], ptr[g_i + 1], size=E_per))
    src = np.concatenate(src_list).astype(np.int32)
    dst = np.concatenate(dst_list).astype(np.int32)
    E = src.shape[0]
    edge_index = jnp.asarray(np.stack([src, dst]))

    x_raw = jax.random.normal(k_x, (N, DIM_IN_RAW), jnp.float32)
    edge_attr_raw = jax.random.normal(k_e, (E, EDGE_DIM_RAW), jnp.float32)

    params = build_params(k_p)

    out, c_samples, sample_index, sample_batch = colour_gnn_forward(
        x_raw, edge_attr_raw, edge_index, sizes, node_batch, params, k_col)

    jax.block_until_ready(out)
    jax.block_until_ready(c_samples)
    assert out.shape == (G, DIM_OUT)
    assert c_samples.shape == (N, NUM_SAMPLES)
    assert sample_index.shape[0] == G * min(sizes[0], NUM_SAMPLES)
    print("KERNEL_OK")
</pallas_src>

<mosaic_0001>
module attributes {stable_mosaic.version = 11 : i64} {
  func.func @_fused_forward_kernel(%arg0: memref<16x8xf32, #tpu.memory_space<vmem>>, %arg1: memref<48x4xf32, #tpu.memory_space<vmem>>, %arg2: memref<48x16xf32, #tpu.memory_space<vmem>>, %arg3: memref<16x48xf32, #tpu.memory_space<vmem>>, %arg4: memref<8x128xf32, #tpu.memory_space<vmem>>, %arg5: memref<1x128xf32, #tpu.memory_space<vmem>>, %arg6: memref<4x128xf32, #tpu.memory_space<vmem>>, %arg7: memref<1x128xf32, #tpu.memory_space<vmem>>, %arg8: memref<2x128x128xf32, #tpu.memory_space<vmem>>, %arg9: memref<2x1x128xf32, #tpu.memory_space<vmem>>, %arg10: memref<2x128x128xf32, #tpu.memory_space<vmem>>, %arg11: memref<2x1x128xf32, #tpu.memory_space<vmem>>, %arg12: memref<2x16xf32, #tpu.memory_space<vmem>>, %arg13: memref<128x128xf32, #tpu.memory_space<vmem>>, %arg14: memref<1x128xf32, #tpu.memory_space<vmem>>, %arg15: memref<2x128xf32, #tpu.memory_space<vmem>>) attributes {dimension_semantics = [], scalar_prefetch = 0 : i64, scratch_operands = 0 : i64, tpu.core_type = #tpu.core_type<tc>} {
    %c0 = arith.constant 0 : index
    %c0_0 = arith.constant 0 : index
    %0 = vector.load %arg0[%c0, %c0_0] : memref<16x8xf32, #tpu.memory_space<vmem>>, vector<16x8xf32>
    %c0_1 = arith.constant 0 : index
    %c0_2 = arith.constant 0 : index
    %1 = vector.load %arg4[%c0_1, %c0_2] : memref<8x128xf32, #tpu.memory_space<vmem>>, vector<8x128xf32>
    %cst = arith.constant dense<0.000000e+00> : vector<16x128xf32>
    %2 = tpu.matmul %0, %1, %cst {dimension_numbers = #tpu.dot_dimension_numbers<[1], [0], [0], [1], [0, 0, 1, 1], [], []>} : vector<16x8xf32>, vector<8x128xf32>, vector<16x128xf32> -> vector<16x128xf32>
    %c0_3 = arith.constant 0 : index
    %c0_4 = arith.constant 0 : index
    %3 = vector.load %arg5[%c0_3, %c0_4] : memref<1x128xf32, #tpu.memory_space<vmem>>, vector<1x128xf32>
    %4 = vector.broadcast %3 : vector<1x128xf32> to vector<16x128xf32>
    %5 = arith.addf %2, %4 : vector<16x128xf32>
    %c0_5 = arith.constant 0 : index
    %c0_6 = arith.constant 0 : index
    %6 = vector.load %arg1[%c0_5, %c0_6] : memref<48x4xf32, #tpu.memory_space<vmem>>, vector<48x4xf32>
    %c0_7 = arith.constant 0 : index
    %c0_8 = arith.constant 0 : index
    %7 = vector.load %arg6[%c0_7, %c0_8] : memref<4x128xf32, #tpu.memory_space<vmem>>, vector<4x128xf32>
    %cst_9 = arith.constant dense<0.000000e+00> : vector<48x128xf32>
    %8 = tpu.matmul %6, %7, %cst_9 {dimension_numbers = #tpu.dot_dimension_numbers<[1], [0], [0], [1], [0, 0, 1, 1], [], []>} : vector<48x4xf32>, vector<4x128xf32>, vector<48x128xf32> -> vector<48x128xf32>
    %c0_10 = arith.constant 0 : index
    %c0_11 = arith.constant 0 : index
    %9 = vector.load %arg7[%c0_10, %c0_11] : memref<1x128xf32, #tpu.memory_space<vmem>>, vector<1x128xf32>
    %10 = vector.broadcast %9 : vector<1x128xf32> to vector<48x128xf32>
    %11 = arith.addf %8, %10 : vector<48x128xf32>
    %c0_12 = arith.constant 0 : index
    %c0_13 = arith.constant 0 : index
    %12 = vector.load %arg2[%c0_12, %c0_13] : memref<48x16xf32, #tpu.memory_space<vmem>>, vector<48x16xf32>
    %c0_14 = arith.constant 0 : index
    %c0_15 = arith.constant 0 : index
    %13 = vector.load %arg3[%c0_14, %c0_15] : memref<16x48xf32, #tpu.memory_space<vmem>>, vector<16x48xf32>
    %cst_16 = arith.constant dense<0.000000e+00> : vector<48x128xf32>
    %14 = tpu.matmul %12, %5, %cst_16 {dimension_numbers = #tpu.dot_dimension_numbers<[1], [0], [0], [1], [0, 0, 1, 1], [], []>} : vector<48x16xf32>, vector<16x128xf32>, vector<48x128xf32> -> vector<48x128xf32>
    %15 = arith.addf %14, %11 : vector<48x128xf32>
    %cst_17 = arith.constant 0.000000e+00 : f32
    %16 = vector.broadcast %cst_17 : f32 to vector<48x128xf32>
    %17 = arith.maximumf %15, %16 : vector<48x128xf32>
    %cst_18 = arith.constant dense<0.000000e+00> : vector<16x128xf32>
    %18 = tpu.matmul %13, %17, %cst_18 {dimension_numbers = #tpu.dot_dimension_numbers<[1], [0], [0], [1], [0, 0, 1, 1], [], []>} : vector<16x48xf32>, vector<48x128xf32>, vector<16x128xf32> -> vector<16x128xf32>
    %cst_19 = arith.constant 1.000000e+00 : f32
    %19 = vector.broadcast %cst_19 : f32 to vector<16x128xf32>
    %20 = arith.mulf %19, %5 : vector<16x128xf32>
    %21 = arith.addf %20, %18 : vector<16x128xf32>
    %c0_20 = arith.constant 0 : index
    %c0_21 = arith.constant 0 : index
    %c0_22 = arith.constant 0 : index
    %22 = vector.load %arg8[%c0_20, %c0_21, %c0_22] : memref<2x128x128xf32, #tpu.memory_space<vmem>>, vector<1x128x128xf32>
    %23 = vector.shape_cast %22 : vector<1x128x128xf32> to vector<128x128xf32>
    %cst_23 = arith.constant dense<0.000000e+00> : vector<16x128xf32>
    %24 = tpu.matmul %21, %23, %cst_23 {dimension_numbers = #tpu.dot_dimension_numbers<[1], [0], [0], [1], [0, 0, 1, 1], [], []>} : vector<16x128xf32>, vector<128x128xf32>, vector<16x128xf32> -> vector<16x128xf32>
    %c0_24 = arith.constant 0 : index
    %c0_25 = arith.constant 0 : index
    %c0_26 = arith.constant 0 : index
    %25 = vector.load %arg9[%c0_24, %c0_25, %c0_26] : memref<2x1x128xf32, #tpu.memory_space<vmem>>, vector<1x1x128xf32>
    %26 = vector.shape_cast %25 : vector<1x1x128xf32> to vector<1x128xf32>
    %27 = vector.broadcast %26 : vector<1x128xf32> to vector<16x128xf32>
    %28 = arith.addf %24, %27 : vector<16x128xf32>
    %cst_27 = arith.constant 0.000000e+00 : f32
    %29 = vector.broadcast %cst_27 : f32 to vector<16x128xf32>
    %30 = arith.maximumf %28, %29 : vector<16x128xf32>
    %c0_28 = arith.constant 0 : index
    %c0_29 = arith.constant 0 : index
    %c0_30 = arith.constant 0 : index
    %31 = vector.load %arg10[%c0_28, %c0_29, %c0_30] : memref<2x128x128xf32, #tpu.memory_space<vmem>>, vector<1x128x128xf32>
    %32 = vector.shape_cast %31 : vector<1x128x128xf32> to vector<128x128xf32>
    %cst_31 = arith.constant dense<0.000000e+00> : vector<16x128xf32>
    %33 = tpu.matmul %30, %32, %cst_31 {dimension_numbers = #tpu.dot_dimension_numbers<[1], [0], [0], [1], [0, 0, 1, 1], [], []>} : vector<16x128xf32>, vector<128x128xf32>, vector<16x128xf32> -> vector<16x128xf32>
    %c0_32 = arith.constant 0 : index
    %c0_33 = arith.constant 0 : index
    %c0_34 = arith.constant 0 : index
    %34 = vector.load %arg11[%c0_32, %c0_33, %c0_34] : memref<2x1x128xf32, #tpu.memory_space<vmem>>, vector<1x1x128xf32>
    %35 = vector.shape_cast %34 : vector<1x1x128xf32> to vector<1x128xf32>
    %36 = vector.broadcast %35 : vector<1x128xf32> to vector<16x128xf32>
    %37 = arith.addf %33, %36 : vector<16x128xf32>
    %cst_35 = arith.constant 0.000000e+00 : f32
    %38 = vector.broadcast %cst_35 : f32 to vector<16x128xf32>
    %39 = arith.maximumf %37, %38 : vector<16x128xf32>
    %40 = arith.addf %5, %39 : vector<16x128xf32>
    %cst_36 = arith.constant dense<0.000000e+00> : vector<48x128xf32>
    %41 = tpu.matmul %12, %40, %cst_36 {dimension_numbers = #tpu.dot_dimension_numbers<[1], [0], [0], [1], [0, 0, 1, 1], [], []>} : vector<48x16xf32>, vector<16x128xf32>, vector<48x128xf32> -> vector<48x128xf32>
    %42 = arith.addf %41, %11 : vector<48x128xf32>
    %cst_37 = arith.constant 0.000000e+00 : f32
    %43 = vector.broadcast %cst_37 : f32 to vector<48x128xf32>
    %44 = arith.maximumf %42, %43 : vector<48x128xf32>
    %cst_38 = arith.constant dense<0.000000e+00> : vector<16x128xf32>
    %45 = tpu.matmul %13, %44, %cst_38 {dimension_numbers = #tpu.dot_dimension_numbers<[1], [0], [0], [1], [0, 0, 1, 1], [], []>} : vector<16x48xf32>, vector<48x128xf32>, vector<16x128xf32> -> vector<16x128xf32>
    %cst_39 = arith.constant 1.000000e+00 : f32
    %46 = vector.broadcast %cst_39 : f32 to vector<16x128xf32>
    %47 = arith.mulf %46, %40 : vector<16x128xf32>
    %48 = arith.addf %47, %45 : vector<16x128xf32>
    %c1 = arith.constant 1 : index
    %c0_40 = arith.constant 0 : index
    %c0_41 = arith.constant 0 : index
    %49 = vector.load %arg8[%c1, %c0_40, %c0_41] : memref<2x128x128xf32, #tpu.memory_space<vmem>>, vector<1x128x128xf32>
    %50 = vector.shape_cast %49 : vector<1x128x128xf32> to vector<128x128xf32>
    %cst_42 = arith.constant dense<0.000000e+00> : vector<16x128xf32>
    %51 = tpu.matmul %48, %50, %cst_42 {dimension_numbers = #tpu.dot_dimension_numbers<[1], [0], [0], [1], [0, 0, 1, 1], [], []>} : vector<16x128xf32>, vector<128x128xf32>, vector<16x128xf32> -> vector<16x128xf32>
    %c1_43 = arith.constant 1 : index
    %c0_44 = arith.constant 0 : index
    %c0_45 = arith.constant 0 : index
    %52 = vector.load %arg9[%c1_43, %c0_44, %c0_45] : memref<2x1x128xf32, #tpu.memory_space<vmem>>, vector<1x1x128xf32>
    %53 = vector.shape_cast %52 : vector<1x1x128xf32> to vector<1x128xf32>
    %54 = vector.broadcast %53 : vector<1x128xf32> to vector<16x128xf32>
    %55 = arith.addf %51, %54 : vector<16x128xf32>
    %cst_46 = arith.constant 0.000000e+00 : f32
    %56 = vector.broadcast %cst_46 : f32 to vector<16x128xf32>
    %57 = arith.maximumf %55, %56 : vector<16x128xf32>
    %c1_47 = arith.constant 1 : index
    %c0_48 = arith.constant 0 : index
    %c0_49 = arith.constant 0 : index
    %58 = vector.load %arg10[%c1_47, %c0_48, %c0_49] : memref<2x128x128xf32, #tpu.memory_space<vmem>>, vector<1x128x128xf32>
    %59 = vector.shape_cast %58 : vector<1x128x128xf32> to vector<128x128xf32>
    %cst_50 = arith.constant dense<0.000000e+00> : vector<16x128xf32>
    %60 = tpu.matmul %57, %59, %cst_50 {dimension_numbers = #tpu.dot_dimension_numbers<[1], [0], [0], [1], [0, 0, 1, 1], [], []>} : vector<16x128xf32>, vector<128x128xf32>, vector<16x128xf32> -> vector<16x128xf32>
    %c1_51 = arith.constant 1 : index
    %c0_52 = arith.constant 0 : index
    %c0_53 = arith.constant 0 : index
    %61 = vector.load %arg11[%c1_51, %c0_52, %c0_53] : memref<2x1x128xf32, #tpu.memory_space<vmem>>, vector<1x1x128xf32>
    %62 = vector.shape_cast %61 : vector<1x1x128xf32> to vector<1x128xf32>
    %63 = vector.broadcast %62 : vector<1x128xf32> to vector<16x128xf32>
    %64 = arith.addf %60, %63 : vector<16x128xf32>
    %cst_54 = arith.constant 0.000000e+00 : f32
    %65 = vector.broadcast %cst_54 : f32 to vector<16x128xf32>
    %66 = arith.maximumf %64, %65 : vector<16x128xf32>
    %67 = arith.addf %40, %66 : vector<16x128xf32>
    %c0_55 = arith.constant 0 : index
    %c0_56 = arith.constant 0 : index
    %68 = vector.load %arg12[%c0_55, %c0_56] : memref<2x16xf32, #tpu.memory_space<vmem>>, vector<2x16xf32>
    %cst_57 = arith.constant dense<0.000000e+00> : vector<2x128xf32>
    %69 = tpu.matmul %68, %67, %cst_57 {dimension_numbers = #tpu.dot_dimension_numbers<[1], [0], [0], [1], [0, 0, 1, 1], [], []>} : vector<2x16xf32>, vector<16x128xf32>, vector<2x128xf32> -> vector<2x128xf32>
    %c0_58 = arith.constant 0 : index
    %c0_59 = arith.constant 0 : index
    %70 = vector.load %arg13[%c0_58, %c0_59] : memref<128x128xf32, #tpu.memory_space<vmem>>, vector<128x128xf32>
    %cst_60 = arith.constant dense<0.000000e+00> : vector<2x128xf32>
    %71 = tpu.matmul %69, %70, %cst_60 {dimension_numbers = #tpu.dot_dimension_numbers<[1], [0], [0], [1], [0, 0, 1, 1], [], []>} : vector<2x128xf32>, vector<128x128xf32>, vector<2x128xf32> -> vector<2x128xf32>
    %c0_61 = arith.constant 0 : index
    %c0_62 = arith.constant 0 : index
    %72 = vector.load %arg14[%c0_61, %c0_62] : memref<1x128xf32, #tpu.memory_space<vmem>>, vector<1x128xf32>
    %73 = vector.broadcast %72 : vector<1x128xf32> to vector<2x128xf32>
    %74 = arith.addf %71, %73 : vector<2x128xf32>
    %c0_63 = arith.constant 0 : index
    %c0_64 = arith.constant 0 : index
    %75 = vector.load %arg15[%c0_63, %c0_64] : memref<2x128xf32, #tpu.memory_space<vmem>>, vector<2x128xf32>
    tpu.vector_store %arg15[%c0_63, %c0_64], %74 {strides = array<i32>} : memref<2x128xf32, #tpu.memory_space<vmem>>, vector<2x128xf32>,
    return
  }
}

</mosaic_0001>

<bundles_post_ra>
// kernel: tpu_custom_call.1
= control target key start
LH: loop header
LB: loop body
LE: loop exit
PB: predicated region body
PF: predicated region fallthrough
CT: control target
= control target key end

     0   :  { %20 = vsyncpa [#allocation3], 0  ;;  %s1059_s0 = inlined_call_operand.vmem [shape: f32[16,8], index: 0, kind: input, shape index: {}]   ;;  %s1060_s1 = inlined_call_operand.vmem [shape: f32[48,4], index: 1, kind: input, shape index: {}]   ;;  %s1061_s2 = inlined_call_operand.vmem [shape: f32[48,16], index: 2, kind: input, shape index: {}]   ;;  %s1062_s3 = inlined_call_operand.vmem [shape: f32[16,48], index: 3, kind: input, shape index: {}]   ;;  %s1063_s4 = inlined_call_operand.vmem [shape: f32[8,128], index: 4, kind: input, shape index: {}]   ;;  %s1064_s5 = inlined_call_operand.vmem [shape: f32[1,128], index: 5, kind: input, shape index: {}]   ;;  %s1065_s6 = inlined_call_operand.vmem [shape: f32[4,128], index: 6, kind: input, shape index: {}]   ;;  %s1066_s7 = inlined_call_operand.vmem [shape: f32[1,128], index: 7, kind: input, shape index: {}]   ;;  %s1067_s8 = inlined_call_operand.hbm [shape: f32[2,128,128], index: 8, kind: input, shape index: {}]   ;;  %s1068_s9 = inlined_call_operand.vmem [shape: f32[2,1,128], index: 9, kind: input, shape index: {}]   ;;  %s1069_s10 = inlined_call_operand.hbm [shape: f32[2,128,128], index: 10, kind: input, shape index: {}]   ;;  %s1070_s11 = inlined_call_operand.vmem [shape: f32[2,1,128], index: 11, kind: input, shape index: {}]   ;;  %s1071_s12 = inlined_call_operand.vmem [shape: f32[2,16], index: 12, kind: input, shape index: {}]   ;;  %s1072_s13 = inlined_call_operand.hbm [shape: f32[128,128], index: 13, kind: input, shape index: {}]   ;;  %s1073_s14 = inlined_call_operand.vmem [shape: f32[1,128], index: 14, kind: input, shape index: {}]   ;;  %s1074_s15 = inlined_call_operand.hbm [shape: f32[2,128], index: 15, kind: output, shape index: {}]  }
   0x1   :  { %21 = vsyncpa [#allocation6], 0 }
   0x2   :  { %22 = vsyncpa [#allocation4], 0  ;;  %s58_s20 = sshll.u32 %s1069_s10, 4  ;;  %s784_s21 = smov [#allocation5]   ;;  %s59_s20 = int_to_ptr.hbm [resolvable:$true] %s58_s20 }
   0x3   :  { %s60_s22 = sshll.u32 %s784_s21, 4  ;;  %s43_s25 = sshll.u32 %s1067_s8, 4  ;;  %s61_s22 = int_to_ptr.vmem [resolvable:$true] %s60_s22  ;;  %s44_s25 = int_to_ptr.hbm [resolvable:$true] %s43_s25 }
   0x4   :  { %s785_s26 = smov 128   ;;  %s786_s27 = smov 8  }
   0x5   :  { %66 = dma.hbm_to_vmem [thread:$0]  %s59_s20, 4096, %s61_s22, [#allocation6], %s785_s26, %s785_s26, %s786_s27  }
   0x6   :  { %s787_s28 = smov [#allocation2]   ;;  %s75_s17 = sshll.u32 %s1072_s13, 4  ;;  %s76_s17 = int_to_ptr.hbm [resolvable:$true] %s75_s17 }
   0x7   :  { %s45_s29 = sshll.u32 %s787_s28, 4  ;;  %s788_s10 = smov [#allocation7]   ;;  %s46_s29 = int_to_ptr.vmem [resolvable:$true] %s45_s29 }
   0x8   :  { %51 = dma.hbm_to_vmem [thread:$0]  %s44_s25, 4096, %s46_s29, [#allocation3], %s785_s26, %s785_s26, %s786_s27  }
   0x9   :  { %s77_s18 = sshll.u32 %s788_s10, 4  ;;  %s78_s18 = int_to_ptr.vmem [resolvable:$true] %s77_s18 }
   0xa   :  { %83 = dma.hbm_to_vmem [thread:$0]  %s76_s17, 2048, %s78_s18, [#allocation6], %s785_s26, %s785_s26, %s786_s27  }
   0xb   :  { %778 = dma.done.wait [#allocation3], 4096  }
   0xc   :  { %779 = vsyncadd [#allocation3], 4294963200 }
   0xd   :  { %780 = dma.done.wait [#allocation6], 6144  }
   0xe   :  { %781 = vsyncadd [#allocation6], 4294961152  ;;  %vm105_vm0 = vcmask 64512   ;;  %v100_v0 = vld [vmem:[%s1063_s4] sm:$0xff]  ;;  %v99_v2 = vld [vmem:[%s1059_s0 + $0x8] sm:$0xff]  ;;  %vm165_vm1 = vcmask 1043456  }
   0xf   :  { %v98_v1 = vld [vmem:[%s1059_s0] sm:$0xff]  ;;  %127 = vmatpush.msra.mxu0 %v100_v0  ;;  %vm146_vm2 = vcmask 31744   ;;  %v136_v5 = vld [vmem:[%s1060_s1 + $0x8] sm:$0xff]  ;;  %v137_v6 = vld [vmem:[%s1060_s1 + $0x10] sm:$0xff]  ;;  %vm212_vm3 = vcmask 130048   ;;  %vm272_vm4 = vcmask 392192  }
  0x10   :  { %641 = vmatmul.msk.f32.vlgmr.msra.gmra.mxu0 %vm105_vm0, %v98_v1  ;;  %v141_v3 = vld [vmem:[%s1065_s6] sm:$0xf]  ;;  %v138_v8 = vld [vmem:[%s1060_s1 + $0x18] sm:$0xff]  ;;  %v930_v15 = vld [vmem:[%s1061_s2 + $0x8] sm:$0xff]  ;;  %s789_s20 = smov [#allocation8]   ;;  %s630_s23 = sshll.u32 %s1074_s15, 4  ;;  %s631_s23 = int_to_ptr.hbm [resolvable:$true] %s630_s23 }
  0x11   :  { %v135_v4 = vld [vmem:[%s1060_s1] sm:$0xff]  ;;  %643 = vmatpush.msk.msra.mxu1 %vm165_vm1, %v141_v3  ;;  %v140_v16 = vld [vmem:[%s1060_s1 + $0x28] sm:$0xff]  ;;  %v941_v17 = vld [vmem:[%s1061_s2 + $0x10] sm:$0xff]  ;;  %s628_s21 = sshll.u32 %s789_s20, 4  ;;  %s629_s21 = int_to_ptr.vmem [resolvable:$true] %s628_s21 }
  0x12   :  { %644 = vmatmul.msk.f32.vlgmr.msra.gmra.mxu1 %vm146_vm2, %v135_v4  ;;  %v675_v9 = vld [vmem:[%s1064_s5] ss:$0 sm:$0xff]  ;;  %v948_v18 = vld [vmem:[%s1061_s2 + $0x18] sm:$0xff]  ;;  %v962_v20 = vld [vmem:[%s1061_s2 + $0x28] sm:$0xff] }
  0x13   :  { %v918_v13 = vld [vmem:[%s1061_s2] sm:$0xff]  ;;  %v319_v31 = vld [vmem:[#allocation2 + $0x78] sm:$0xff]  ;;  %v318_v32 = vld [vmem:[#allocation2 + $0x70] sm:$0xff] }
  0x14   :  { %v139_v14 = vld [vmem:[%s1060_s1 + $0x20] sm:$0xff]  ;;  %324 = vmatpush.msrb.mxu1 %v319_v31  ;;  %v317_v34 = vld [vmem:[#allocation2 + $0x68] sm:$0xff]  ;;  %v315_v39 = vld [vmem:[#allocation2 + $0x58] sm:$0xff] }
  0x15   :  { %v955_v19 = vld [vmem:[%s1061_s2 + $0x20] sm:$0xff]  ;;  %v314_v42 = vld [vmem:[#allocation2 + $0x50] sm:$0xff]  ;;  %v313_v46 = vld [vmem:[#allocation2 + $0x48] sm:$0xff] }
  0x16   :  { %v676_v35 = vld [vmem:[%s1066_s7] ss:$0 sm:$0xff]  ;;  %325 = vmatpush.msrb.mxu1 %v318_v32  ;;  %v311_v54 = vld [vmem:[#allocation2 + $0x38] sm:$0xff]  ;;  %v310_v57 = vld [vmem:[#allocation2 + $0x30] sm:$0xff] }
  0x17   :  { %v316_v36 = vld [vmem:[#allocation2 + $0x60] sm:$0xff]  ;;  %v309_v60 = vld [vmem:[#allocation2 + $0x28] sm:$0xff]  ;;  %v307_v1 = vld [vmem:[#allocation2 + $0x18] sm:$0xff] }
  0x18   :  { %642 = vmatmul.msk.f32.gmra.mxu0 %vm105_vm0, %v99_v2  ;;  %326 = vmatpush.msrb.mxu1 %v317_v34  ;;  %v312_v50 = vld [vmem:[#allocation2 + $0x40] sm:$0xff]  ;;  %v306_v2 = vld [vmem:[#allocation2 + $0x10] sm:$0xff]  ;;  %v997_v3 = vld [vmem:[%s1062_s3 + $0x8] sm:$0xff] }
  0x19   :  { %v308_v62 = vld [vmem:[#allocation2 + $0x20] sm:$0xff]  ;;  %v305_v4 = vld [vmem:[#allocation2 + $0x8] sm:$0xff]  ;;  %v351_v31 = vld [vmem:[#allocation5 + $0x10] sm:$0xff] }
  0x1a   :  { %645 = vmatmul.msk.f32.gmra.mxu1 %vm146_vm2, %v136_v5  ;;  %v990_v0 = vld [vmem:[%s1062_s3] sm:$0xff]  ;;  %v350_v32 = vld [vmem:[#allocation5 + $0x8] sm:$0xff] }
  0x1b   :  { %327 = vmatpush.msrb.mxu1 %v316_v36  ;;  %v304_v5 = vld [vmem:[#allocation2] sm:$0xff] }
  0x1c   :  { %v677_v34 = vld [vmem:[%s1068_s9] ss:$0 sm:$0xff] }
  0x1d   :  { %328 = vmatpush.msrb.mxu1 %v315_v39 }
  0x1f   :  { %329 = vmatpush.msrb.mxu1 %v314_v42 }
  0x21   :  { %330 = vmatpush.msrb.mxu1 %v313_v46  ;;  %v678_v46 = vld [vmem:[%s1070_s11] ss:$0 sm:$0xff] }
  0x22   :  { %646 = vmatmul.msk.f32.gmra.mxu1 %vm146_vm2, %v137_v6  ;;  %v364_v6 = vld [vmem:[#allocation5 + $0x78] sm:$0xff] }
  0x23   :  { %331 = vmatpush.msrb.mxu1 %v312_v50 }
  0x25   :  { %332 = vmatpush.msrb.mxu1 %v311_v54 }
  0x27   :  { %333 = vmatpush.msrb.mxu1 %v310_v57 }
  0x29   :  { %334 = vmatpush.msrb.mxu1 %v309_v60  ;;  %v474_v60 = vld [vmem:[#allocation2 + $0xd8] sm:$0xff] }
  0x2a   :  { %647 = vmatmul.msk.f32.gmra.mxu1 %vm146_vm2, %v138_v8  ;;  %v362_v8 = vld [vmem:[#allocation5 + $0x68] sm:$0xff] }
  0x2b   :  { %335 = vmatpush.msrb.mxu1 %v308_v62  ;;  %v472_v62 = vld [vmem:[#allocation2 + $0xc8] sm:$0xff] }
  0x2d   :  { %336 = vmatpush.msrb.mxu1 %v307_v1 }
  0x2f   :  { %337 = vmatpush.msrb.mxu1 %v306_v2  ;;  %v471_v2 = vld [vmem:[#allocation2 + $0xc0] sm:$0xff] }
  0x31   :  { %338 = vmatpush.msrb.mxu1 %v305_v4 }
  0x32   :  { %648 = vmatmul.msk.f32.gmra.mxu1 %vm146_vm2, %v139_v14  ;;  %v359_v14 = vld [vmem:[#allocation5 + $0x50] sm:$0xff] }
  0x33   :  { %339 = vmatpush.msrb.mxu1 %v304_v5 }
  0x3a   :  { %649 = vmatmul.msk.f32.gmra.mxu1 %vm146_vm2, %v140_v16  ;;  %v358_v16 = vld [vmem:[#allocation5 + $0x48] sm:$0xff] }
  0x8d   :  { %v129_v7 = vpop.f32.mrf.mxu0 }
  0x8e   :  { %v912_v12 = vadd.f32 %v675_v9, %v129_v7  ;;  %v363_v7 = vld [vmem:[#allocation5 + $0x70] sm:$0xff] }
  0x8f   :  { %v186_v21 = vpop.f32.mrf.mxu1 }
  0x90   :  { %v982_v51 = vadd.f32 %v676_v35, %v186_v21  ;;  %v357_v21 = vld [vmem:[#allocation5 + $0x40] sm:$0xff] }
  0x95   :  { %v132_v10 = vpop.f32.mrf.mxu0 }
  0x96   :  { %v910_v11 = vadd.f32 %v675_v9, %v132_v10  ;;  %v361_v9 = vld [vmem:[#allocation5 + $0x60] sm:$0xff]  ;;  %v360_v10 = vld [vmem:[#allocation5 + $0x58] sm:$0xff] }
  0x97   :  { %v189_v22 = vpop.f32.mrf.mxu1 }
  0x98   :  { %245 = vmatpush.msra.mxu2 %v910_v11  ;;  %v979_v47 = vadd.f32 %v676_v35, %v189_v22  ;;  %v356_v22 = vld [vmem:[#allocation5 + $0x38] sm:$0xff] }
  0x9a   :  { %246 = vmatpush.msra.mxu2 %v912_v12 }
  0x9b   :  { %650 = vmatmul.msk.f32.vlgmr.msra.gmra.mxu2 %vm212_vm3, %v918_v13 }
  0x9f   :  { %v192_v24 = vpop.f32.mrf.mxu1 }
  0xa0   :  { %v975_v43 = vadd.f32 %v676_v35, %v192_v24  ;;  %v354_v24 = vld [vmem:[#allocation5 + $0x28] sm:$0xff] }
  0xa3   :  { %651 = vmatmul.msk.f32.gmra.mxu2 %vm212_vm3, %v930_v15 }
  0xa7   :  { %v195_v26 = vpop.f32.mrf.mxu1 }
  0xa8   :  { %v973_v40 = vadd.f32 %v676_v35, %v195_v26 }
  0xab   :  { %652 = vmatmul.msk.f32.gmra.mxu2 %vm212_vm3, %v941_v17 }
  0xaf   :  { %v198_v29 = vpop.f32.mrf.mxu1 }
  0xb0   :  { %v969_v37 = vadd.f32 %v676_v35, %v198_v29 }
  0xb3   :  { %653 = vmatmul.msk.f32.gmra.mxu2 %vm212_vm3, %v948_v18 }
  0xb7   :  { %v201_v33 = vpop.f32.mrf.mxu1 }
  0xb8   :  { %v971_v38 = vadd.f32 %v676_v35, %v201_v33  ;;  %v349_v33 = vld [vmem:[#allocation5] sm:$0xff] }
  0xbb   :  { %654 = vmatmul.msk.f32.gmra.mxu2 %vm212_vm3, %v955_v19 }
  0xc3   :  { %655 = vmatmul.msk.f32.gmra.mxu2 %vm212_vm3, %v962_v20 }
 0x11e   :  { %v248_v23 = vpop.f32.mrf.mxu2 }
 0x11f   :  { %v249_v58 = vadd.f32 %v248_v23, %v982_v51  ;;  %v355_v23 = vld [vmem:[#allocation5 + $0x30] sm:$0xff] }
 0x121   :  { %v266_v63 = vmax.f32 %v249_v58, 0.0  ;;  %v478_v58 = vld [vmem:[#allocation2 + $0xf8] sm:$0xff] }
 0x122   :  { %484 = vmatpush.msrb.mxu2 %v478_v58  ;;  %v591_v58 = vld [vmem:[#allocation7 + $0x48] sm:$0xff] }
 0x126   :  { %v251_v25 = vpop.f32.mrf.mxu2 }
 0x127   :  { %v252_v55 = vadd.f32 %v251_v25, %v979_v47  ;;  %v353_v25 = vld [vmem:[#allocation5 + $0x20] sm:$0xff] }
 0x129   :  { %v267_v61 = vmax.f32 %v252_v55, 0.0 }
 0x12e   :  { %v254_v27 = vpop.f32.mrf.mxu2 }
 0x12f   :  { %v255_v52 = vadd.f32 %v254_v27, %v975_v43 }
 0x131   :  { %v268_v59 = vmax.f32 %v255_v52, 0.0 }
 0x136   :  { %v257_v28 = vpop.f32.mrf.mxu2 }
 0x137   :  { %v258_v48 = vadd.f32 %v257_v28, %v973_v40  ;;  %v352_v28 = vld [vmem:[#allocation5 + $0x18] sm:$0xff] }
 0x139   :  { %v269_v56 = vmax.f32 %v258_v48, 0.0 }
 0x13e   :  { %v260_v30 = vpop.f32.mrf.mxu2 }
 0x13f   :  { %v261_v44 = vadd.f32 %v260_v30, %v969_v37 }
 0x141   :  { %v270_v53 = vmax.f32 %v261_v44, 0.0 }
 0x146   :  { %v263_v41 = vpop.f32.mrf.mxu2 }
 0x147   :  { %v264_v45 = vadd.f32 %v263_v41, %v971_v38 }
 0x149   :  { %v271_v49 = vmax.f32 %v264_v45, 0.0 }
 0x14b   :  { %289 = vmatpush.msra.mxu3 %v271_v49 }
 0x14d   :  { %290 = vmatpush.msra.mxu3 %v270_v53 }
 0x14f   :  { %291 = vmatpush.msra.mxu3 %v269_v56 }
 0x151   :  { %292 = vmatpush.msra.mxu3 %v268_v59  ;;  %v477_v59 = vld [vmem:[#allocation2 + $0xf0] sm:$0xff] }
 0x152   :  { %485 = vmatpush.msrb.mxu2 %v477_v59  ;;  %v590_v59 = vld [vmem:[#allocation7 + $0x40] sm:$0xff] }
 0x153   :  { %293 = vmatpush.msra.mxu3 %v267_v61  ;;  %v473_v61 = vld [vmem:[#allocation2 + $0xd0] sm:$0xff] }
 0x155   :  { %294 = vmatpush.msra.mxu3 %v266_v63 }
 0x156   :  { %656 = vmatmul.msk.f32.vlgmr.msra.gmra.mxu3 %vm272_vm4, %v990_v0 }
 0x157   :  { %369 = vmatpush.msrb.mxu3 %v364_v6  ;;  %v470_v6 = vld [vmem:[#allocation2 + $0xb8] sm:$0xff] }
 0x159   :  { %370 = vmatpush.msrb.mxu3 %v363_v7 }
 0x15b   :  { %371 = vmatpush.msrb.mxu3 %v362_v8 }
 0x15d   :  { %372 = vmatpush.msrb.mxu3 %v361_v9 }
 0x15e   :  { %657 = vmatmul.msk.f32.gmra.mxu3 %vm272_vm4, %v997_v3 }
 0x15f   :  { %373 = vmatpush.msrb.mxu3 %v360_v10 }
 0x161   :  { %374 = vmatpush.msrb.mxu3 %v359_v14 }
 0x163   :  { %375 = vmatpush.msrb.mxu3 %v358_v16  ;;  %v466_v16 = vld [vmem:[#allocation2 + $0x98] sm:$0xff] }
 0x165   :  { %376 = vmatpush.msrb.mxu3 %v357_v21  ;;  %v463_v21 = vld [vmem:[#allocation2 + $0x80] sm:$0xff] }
 0x167   :  { %377 = vmatpush.msrb.mxu3 %v356_v22  ;;  %v525_v22 = vld [vmem:[#allocation5 + $0xf8] sm:$0xff] }
 0x169   :  { %378 = vmatpush.msrb.mxu3 %v355_v23  ;;  %v524_v23 = vld [vmem:[#allocation5 + $0xf0] sm:$0xff] }
 0x16b   :  { %379 = vmatpush.msrb.mxu3 %v354_v24  ;;  %v523_v24 = vld [vmem:[#allocation5 + $0xe8] sm:$0xff] }
 0x16d   :  { %380 = vmatpush.msrb.mxu3 %v353_v25  ;;  %v522_v25 = vld [vmem:[#allocation5 + $0xe0] sm:$0xff] }
 0x16f   :  { %381 = vmatpush.msrb.mxu3 %v352_v28  ;;  %v518_v28 = vld [vmem:[#allocation5 + $0xc0] sm:$0xff] }
 0x171   :  { %382 = vmatpush.msrb.mxu3 %v351_v31  ;;  %v514_v31 = vld [vmem:[#allocation5 + $0xa0] sm:$0xff] }
 0x173   :  { %383 = vmatpush.msrb.mxu3 %v350_v32 }
 0x175   :  { %384 = vmatpush.msrb.mxu3 %v349_v33 }
 0x177   :  { %531 = vmatpush.msra.mxu3 %v525_v22 }
 0x179   :  { %532 = vmatpush.msra.mxu3 %v524_v23 }
 0x17b   :  { %533 = vmatpush.msra.mxu3 %v523_v24 }
 0x17d   :  { %534 = vmatpush.msra.mxu3 %v522_v25 }
 0x1d9   :  { %v296_v26 = vpop.f32.mrf.mxu3 }
 0x1da   :  { %v302_v27 = vadd.f32 %v296_v26, %v912_v12  ;;  %v521_v26 = vld [vmem:[#allocation5 + $0xd8] sm:$0xff] }
 0x1db   :  { %535 = vmatpush.msra.mxu3 %v521_v26 }
 0x1dc   :  { %340 = vmatmul.f32.vlgmr.msrb.gmra.mxu1 %v302_v27  ;;  %v519_v27 = vld [vmem:[#allocation5 + $0xc8] sm:$0xff] }
 0x1e1   :  { %v299_v29 = vpop.f32.mrf.mxu3 }
 0x1e2   :  { %v303_v30 = vadd.f32 %v299_v29, %v910_v11  ;;  %v516_v29 = vld [vmem:[#allocation5 + $0xb0] sm:$0xff] }
 0x1e4   :  { %343 = vmatmul.f32.gmra.mxu1 %v303_v30  ;;  %v515_v30 = vld [vmem:[#allocation5 + $0xa8] sm:$0xff] }
 0x259   :  { %v341_v35 = vpop.f32.mrf.mxu1 }
 0x25a   :  { %v342_v36 = vadd.f32 %v677_v34, %v341_v35 }
 0x25c   :  { %v347_v39 = vmax.f32 %v342_v36, 0.0 }
 0x25e   :  { %385 = vmatmul.f32.vlgmr.msrb.gmra.mxu3 %v347_v39  ;;  %v512_v39 = vld [vmem:[#allocation5 + $0x90] sm:$0xff] }
 0x261   :  { %v344_v41 = vpop.f32.mrf.mxu1 }
 0x262   :  { %v345_v42 = vadd.f32 %v677_v34, %v344_v41  ;;  %v513_v34 = vld [vmem:[#allocation5 + $0x98] sm:$0xff]  ;;  %v511_v41 = vld [vmem:[#allocation5 + $0x88] sm:$0xff] }
 0x264   :  { %v348_v44 = vmax.f32 %v345_v42, 0.0  ;;  %v510_v42 = vld [vmem:[#allocation5 + $0x80] sm:$0xff] }
 0x266   :  { %388 = vmatmul.f32.gmra.mxu3 %v348_v44  ;;  %v679_v44 = vld [vmem:[%s1068_s9 + $0x1] ss:$0 sm:$0xff] }
 0x2e1   :  { %v386_v45 = vpop.f32.mrf.mxu3 }
 0x2e2   :  { %v387_v48 = vadd.f32 %v678_v46, %v386_v45 }
 0x2e4   :  { %v392_v52 = vmax.f32 %v387_v48, 0.0 }
 0x2e6   :  { %v1013_v55 = vadd.f32 %v392_v52, %v912_v12 }
 0x2e9   :  { %v389_v49 = vpop.f32.mrf.mxu3 }
 0x2ea   :  { %v390_v50 = vadd.f32 %v678_v46, %v389_v49 }
 0x2ec   :  { %v393_v53 = vmax.f32 %v390_v50, 0.0 }
 0x2ee   :  { %v1010_v54 = vadd.f32 %v393_v53, %v910_v11  ;;  %v597_v53 = vld [vmem:[#allocation7 + $0x78] sm:$0xff] }
 0x2f0   :  { %410 = vmatpush.msrb.mxu0 %v1010_v54 }
 0x2f2   :  { %411 = vmatpush.msrb.mxu0 %v1013_v55 }
 0x2f3   :  { %658 = vmatmul.msk.f32.vlgmr.msrb.gmra.mxu0 %vm212_vm3, %v918_v13 }
 0x2f4   :  { %602 = vmatpush.msra.mxu0 %v597_v53 }
 0x2fb   :  { %659 = vmatmul.msk.f32.gmra.mxu0 %vm212_vm3, %v930_v15  ;;  %v476_v15 = vld [vmem:[#allocation2 + $0xe8] sm:$0xff] }
 0x2fc   :  { %486 = vmatpush.msrb.mxu2 %v476_v15 }
 0x303   :  { %660 = vmatmul.msk.f32.gmra.mxu0 %vm212_vm3, %v941_v17  ;;  %v475_v17 = vld [vmem:[#allocation2 + $0xe0] sm:$0xff] }
 0x304   :  { %487 = vmatpush.msrb.mxu2 %v475_v17  ;;  %v589_v17 = vld [vmem:[#allocation7 + $0x38] sm:$0xff] }
 0x306   :  { %488 = vmatpush.msrb.mxu2 %v474_v60  ;;  %v588_v60 = vld [vmem:[#allocation7 + $0x30] sm:$0xff] }
 0x308   :  { %489 = vmatpush.msrb.mxu2 %v473_v61  ;;  %v587_v61 = vld [vmem:[#allocation7 + $0x28] sm:$0xff] }
 0x30a   :  { %490 = vmatpush.msrb.mxu2 %v472_v62 }
 0x30b   :  { %661 = vmatmul.msk.f32.gmra.mxu0 %vm212_vm3, %v948_v18 }
 0x30c   :  { %491 = vmatpush.msrb.mxu2 %v471_v2  ;;  %v584_v2 = vld [vmem:[#allocation7 + $0x10] sm:$0xff] }
 0x30e   :  { %492 = vmatpush.msrb.mxu2 %v470_v6  ;;  %v583_v6 = vld [vmem:[#allocation7 + $0x8] sm:$0xff] }
 0x313   :  { %662 = vmatmul.msk.f32.gmra.mxu0 %vm212_vm3, %v955_v19 }
 0x31b   :  { %663 = vmatmul.msk.f32.gmra.mxu0 %vm212_vm3, %v962_v20 }
 0x370   :  { %v413_v11 = vpop.f32.mrf.mxu0 }
 0x378   :  { %v416_v12 = vpop.f32.mrf.mxu0 }
 0x379   :  { %v417_v7 = vadd.f32 %v416_v12, %v979_v47  ;;  %v465_v47 = vld [vmem:[#allocation2 + $0x90] sm:$0xff]  ;;  %v595_v12 = vld [vmem:[#allocation7 + $0x68] sm:$0xff] }
 0x37b   :  { %v432_v10 = vmax.f32 %v417_v7, 0.0 }
 0x380   :  { %v419_v56 = vpop.f32.mrf.mxu0 }
 0x381   :  { %v420_v4 = vadd.f32 %v419_v56, %v975_v43  ;;  %v467_v43 = vld [vmem:[#allocation2 + $0xa0] sm:$0xff] }
 0x382   :  { %v594_v56 = vld [vmem:[#allocation7 + $0x60] sm:$0xff] }
 0x383   :  { %v433_v9 = vmax.f32 %v420_v4, 0.0 }
 0x388   :  { %v422_v57 = vpop.f32.mrf.mxu0 }
 0x389   :  { %v423_v63 = vadd.f32 %v422_v57, %v973_v40  ;;  %v468_v40 = vld [vmem:[#allocation2 + $0xa8] sm:$0xff]  ;;  %v593_v57 = vld [vmem:[#allocation7 + $0x58] sm:$0xff] }
 0x38b   :  { %v434_v8 = vmax.f32 %v423_v63, 0.0  ;;  %v585_v63 = vld [vmem:[#allocation7 + $0x18] sm:$0xff] }
 0x390   :  { %v425_v13 = vpop.f32.mrf.mxu0 }
 0x391   :  { %v426_v19 = vadd.f32 %v425_v13, %v969_v37  ;;  %v469_v37 = vld [vmem:[#allocation2 + $0xb0] sm:$0xff] }
 0x392   :  { %493 = vmatpush.msrb.mxu2 %v469_v37  ;;  %v592_v13 = vld [vmem:[#allocation7 + $0x50] sm:$0xff] }
 0x393   :  { %v435_v5 = vmax.f32 %v426_v19, 0.0  ;;  %v586_v19 = vld [vmem:[#allocation7 + $0x20] sm:$0xff] }
 0x394   :  { %494 = vmatpush.msrb.mxu2 %v468_v40 }
 0x396   :  { %495 = vmatpush.msrb.mxu2 %v467_v43 }
 0x398   :  { %v428_v18 = vpop.f32.mrf.mxu0  ;;  %496 = vmatpush.msrb.mxu2 %v466_v16 }
 0x399   :  { %v429_v20 = vadd.f32 %v428_v18, %v971_v38  ;;  %v414_v38 = vadd.f32 %v413_v11, %v982_v51  ;;  %v464_v51 = vld [vmem:[#allocation2 + $0x88] sm:$0xff]  ;;  %v596_v11 = vld [vmem:[#allocation7 + $0x70] sm:$0xff]  ;;  %v680_v18 = vld [vmem:[%s1070_s11 + $0x1] ss:$0 sm:$0xff] }
 0x39a   :  { %497 = vmatpush.msrb.mxu2 %v465_v47  ;;  %603 = vmatpush.msra.mxu0 %v596_v11 }
 0x39b   :  { %v436_v1 = vmax.f32 %v429_v20, 0.0  ;;  %v431_v14 = vmax.f32 %v414_v38, 0.0  ;;  %v558_v38 = vld [vmem:[%s1071_s12] sm:$0x3] }
 0x39c   :  { %498 = vmatpush.msrb.mxu2 %v464_v51  ;;  %604 = vmatpush.msra.mxu0 %v595_v12 }
 0x39d   :  { %447 = vmatpush.msra.mxu1 %v436_v1 }
 0x39e   :  { %499 = vmatpush.msrb.mxu2 %v463_v21  ;;  %605 = vmatpush.msra.mxu0 %v594_v56 }
 0x39f   :  { %448 = vmatpush.msra.mxu1 %v435_v5 }
 0x3a0   :  { %606 = vmatpush.msra.mxu0 %v593_v57 }
 0x3a1   :  { %449 = vmatpush.msra.mxu1 %v434_v8  ;;  %v582_v8 = vld [vmem:[#allocation7] sm:$0xff] }
 0x3a2   :  { %607 = vmatpush.msra.mxu0 %v592_v13 }
 0x3a3   :  { %450 = vmatpush.msra.mxu1 %v433_v9 }
 0x3a4   :  { %608 = vmatpush.msra.mxu0 %v591_v58 }
 0x3a5   :  { %451 = vmatpush.msra.mxu1 %v432_v10 }
 0x3a6   :  { %609 = vmatpush.msra.mxu0 %v590_v59 }
 0x3a7   :  { %452 = vmatpush.msra.mxu1 %v431_v14 }
 0x3a8   :  { %664 = vmatmul.msk.f32.vlgmr.msra.gmra.mxu1 %vm272_vm4, %v990_v0  ;;  %v520_v0 = vld [vmem:[#allocation5 + $0xd0] sm:$0xff]  ;;  %610 = vmatpush.msra.mxu0 %v589_v17 }
 0x3a9   :  { %536 = vmatpush.msra.mxu3 %v520_v0 }
 0x3aa   :  { %611 = vmatpush.msra.mxu0 %v588_v60 }
 0x3ab   :  { %537 = vmatpush.msra.mxu3 %v519_v27 }
 0x3ac   :  { %612 = vmatpush.msra.mxu0 %v587_v61 }
 0x3ad   :  { %538 = vmatpush.msra.mxu3 %v518_v28 }
 0x3ae   :  { %613 = vmatpush.msra.mxu0 %v586_v19 }
 0x3b0   :  { %665 = vmatmul.msk.f32.gmra.mxu1 %vm272_vm4, %v997_v3  ;;  %v517_v3 = vld [vmem:[#allocation5 + $0xb8] sm:$0xff]  ;;  %614 = vmatpush.msra.mxu0 %v585_v63 }
 0x3b1   :  { %539 = vmatpush.msra.mxu3 %v517_v3 }
 0x3b2   :  { %615 = vmatpush.msra.mxu0 %v584_v2 }
 0x3b3   :  { %540 = vmatpush.msra.mxu3 %v516_v29 }
 0x3b4   :  { %616 = vmatpush.msra.mxu0 %v583_v6 }
 0x3b5   :  { %541 = vmatpush.msra.mxu3 %v515_v30 }
 0x3b6   :  { %617 = vmatpush.msra.mxu0 %v582_v8 }
 0x3b7   :  { %542 = vmatpush.msra.mxu3 %v514_v31 }
 0x3b9   :  { %543 = vmatpush.msra.mxu3 %v513_v34 }
 0x3bb   :  { %544 = vmatpush.msra.mxu3 %v512_v39 }
 0x3bd   :  { %545 = vmatpush.msra.mxu3 %v511_v41 }
 0x3bf   :  { %546 = vmatpush.msra.mxu3 %v510_v42 }
 0x425   :  { %v454_v32 = vpop.f32.mrf.mxu1 }
 0x426   :  { %v460_v33 = vadd.f32 %v454_v32, %v1013_v55 }
 0x428   :  { %500 = vmatmul.f32.vlgmr.msrb.gmra.mxu2 %v460_v33 }
 0x42d   :  { %v457_v35 = vpop.f32.mrf.mxu1 }
 0x42e   :  { %v461_v36 = vadd.f32 %v457_v35, %v1010_v54 }
 0x430   :  { %503 = vmatmul.f32.gmra.mxu2 %v461_v36 }
 0x4ab   :  { %v501_v45 = vpop.f32.mrf.mxu2 }
 0x4ac   :  { %v502_v46 = vadd.f32 %v679_v44, %v501_v45 }
 0x4ae   :  { %v507_v48 = vmax.f32 %v502_v46, 0.0 }
 0x4b0   :  { %547 = vmatmul.f32.vlgmr.msra.gmra.mxu3 %v507_v48 }
 0x4b3   :  { %v504_v49 = vpop.f32.mrf.mxu2 }
 0x4b4   :  { %v505_v50 = vadd.f32 %v679_v44, %v504_v49 }
 0x4b6   :  { %v508_v52 = vmax.f32 %v505_v50, 0.0 }
 0x4b8   :  { %550 = vmatmul.f32.gmra.mxu3 %v508_v52 }
 0x533   :  { %v548_v15 = vpop.f32.mrf.mxu3 }
 0x534   :  { %v549_v20 = vadd.f32 %v680_v18, %v548_v15 }
 0x536   :  { %v554_v4 = vmax.f32 %v549_v20, 0.0 }
 0x538   :  { %v556_v37 = vadd.f32 %v554_v4, %v1013_v55 }
 0x53b   :  { %v551_v62 = vpop.f32.mrf.mxu3 }
 0x53c   :  { %v552_v1 = vadd.f32 %v680_v18, %v551_v62 }
 0x53e   :  { %v555_v5 = vmax.f32 %v552_v1, 0.0 }
 0x540   :  { %v557_v7 = vadd.f32 %v555_v5, %v1010_v54  ;;  %v681_v54 = vld [vmem:[%s1073_s14] ss:$0 sm:$0xff] }
 0x542   :  { %576 = vmatpush.msrb.mxu1 %v557_v7 }
 0x544   :  { %577 = vmatpush.msrb.mxu1 %v556_v37 }
 0x545   :  { %668 = vmatmul.msk.f32.vlgmr.msrb.gmra.mxu1 %vm212_vm3, %v558_v38 }
 0x5c2   :  { %v579_v9 = vpop.f32.mrf.mxu1 }
 0x5c3   :  { %618 = vmatmul.f32.vlgmr.msra.gmra.mxu0 %v579_v9 }
 0x640   :  { %v619_v55 = vpop.f32.mrf.mxu0 }
 0x641   :  { %v620_v40 = vadd.f32 %v681_v54, %v619_v55 }
 0x643   :  { %622 = vst [vmem:[#allocation8] sm:$0x3] %v620_v40 }
 0x644   :  { %633 = dma.vmem_to_hbm [thread:$0]  %s629_s21, 32, %s631_s23, [#allocation4]  }
 0x645   :  { %782 = dma.done.wait [#allocation4], 32  }
 0x646   :  { %783 = vsyncadd [#allocation4], 4294967264 }
 0x647   :  { %638 = vsyncpa [#allocation3], 1 }
 0x648   :  { %639 = vsyncpa [#allocation6], 1 }
 0x649   :  { %640 = vsyncpa [#allocation4], 1 }

</bundles_post_ra>
